<compile_context>
chip_gen: v7x
topology: tpu7x:2x2x1
jax: 0.10.0
libtpu: 0.0.40
codegen_flags: <defaults>
</compile_context>

<pallas_src>
import functools

import jax
import jax.numpy as jnp
from jax import lax
from jax.experimental import pallas as pl
from jax.experimental.pallas import tpu as pltpu


def _cam_kernel(gamma_ref, x_ref, out_ref, attn_ref, *cache,
                cache_x: bool, precision):
    """One (batch, phase, n_tile) grid step.

    gamma_ref : (1,) f32 in SMEM
    x_ref     : (C, tn) tile of the flattened input (native dtype)
    out_ref   : (C, tn) tile of the output
    attn_ref  : (C, C) f32 VMEM scratch; energy accumulator during phase 0,
                attention matrix afterwards.
    cache     : optional (nt, C, tn) VMEM cache of x (present iff cache_x).
    """
    xcache_ref = cache[0] if cache_x else None

    phase = pl.program_id(1)
    t = pl.program_id(2)
    nt = pl.num_programs(2)

    @pl.when((phase == 0) & (t == 0))
    def _init_energy():
        attn_ref[...] = jnp.zeros_like(attn_ref)

    @pl.when(phase == 0)
    def _accumulate_energy():
        x = x_ref[...]                                     # (C, tn)
        if cache_x:
            # Stash the tile so phase 1 reads VMEM instead of HBM.
            xcache_ref[t] = x
        # energy += x_tile @ x_tile^T (contract trailing axis of both).
        attn_ref[...] += lax.dot_general(
            x, x,
            dimension_numbers=(((1,), (1,)), ((), ())),
            preferred_element_type=jnp.float32,
            precision=precision,
        )

    @pl.when((phase == 0) & (t == nt - 1))
    def _finalize_attention():
        energy = attn_ref[...]
        # softmax(rowmax(E) - E) == exp(rowmin(E) - E) / rowsum(...)
        e_min = jnp.min(energy, axis=-1, keepdims=True)
        p = jnp.exp(e_min - energy)
        denom = jnp.sum(p, axis=-1, keepdims=True)
        attn_ref[...] = p / denom                          # exact normalisation

    @pl.when(phase == 1)
    def _apply_attention():
        x = xcache_ref[t] if cache_x else x_ref[...]
        attn = attn_ref[...]
        if attn.dtype != x.dtype:                          # trace-time branch
            attn = attn.astype(x.dtype)
        o = jnp.dot(attn, x, preferred_element_type=jnp.float32,
                    precision=precision)
        gamma = gamma_ref[0]
        out_ref[...] = (gamma * o + x.astype(jnp.float32)).astype(out_ref.dtype)


def _round_up(v, m):
    return (v + m - 1) // m * m


def _pick_tile_n(n_pad, c, itemsize, target_bytes=2 << 20):
    """Largest multiple of 128 dividing n_pad with (C, tn) tile ~target_bytes."""
    cap = max(128, (target_bytes // max(1, c * itemsize)) // 128 * 128)
    tn = min(cap, n_pad)
    tn -= tn % 128
    tn = max(tn, 128)
    while n_pad % tn != 0:       # n_pad is a multiple of 128 -> terminates
        tn -= 128
    return tn


def cam_module(x, gamma, *, tile_n=None, cache_budget_bytes=16 << 20,
               precision=jax.lax.Precision.HIGHEST):
    """x: (B, C, H, W), gamma: scalar/(1,)  ->  (B, C, H, W). DANet CAM forward."""
    B, C, H, W = x.shape
    N = H * W
    itemsize = jnp.dtype(x.dtype).itemsize

    # Zero-pad N to a multiple of 128: zero columns are exact no-ops for
    # E = X @ X^T and produce zero output columns we slice off below. Keeps
    # every tile lane-dense and VMEM bounded even for odd spatial sizes.
    N_pad = _round_up(N, 128)
    x_flat = x.reshape(B, C, N)
    if N_pad != N:
        x_flat = jnp.pad(x_flat, ((0, 0), (0, 0), (0, N_pad - N)))

    tn = _pick_tile_n(N_pad, C, itemsize) if tile_n is None else tile_n
    assert N_pad % tn == 0 and tn % 128 == 0, "tile_n must be a 128-multiple dividing padded N"
    nt = N_pad // tn

    # Cache X in VMEM (single HBM read of x) whenever it fits the budget.
    cache_bytes = nt * _round_up(C, 8) * tn * itemsize
    cache_x = cache_bytes <= cache_budget_bytes

    gamma = jnp.asarray(gamma, jnp.float32).reshape(1)

    if cache_x:
        # Walk the N tiles in phase 0; park on the last tile in phase 1 so no
        # HBM re-read is issued (phase 1 reads the VMEM cache instead).
        x_index = lambda b, p, t: (b, 0, t * (1 - p) + (nt - 1) * p)
    else:
        x_index = lambda b, p, t: (b, 0, t)

    scratch = [pltpu.VMEM((C, C), jnp.float32)]
    if cache_x:
        scratch.append(pltpu.VMEM((nt, C, tn), x.dtype))

    kernel = functools.partial(_cam_kernel, cache_x=cache_x, precision=precision)

    # Explicit VMEM budget (double-buffered x/out tiles + scratches), clamped
    # so the same request is valid on v5e/v6e (128 MiB) and v7x (64 MiB).
    tile_bytes = _round_up(C, 8) * tn * itemsize
    need = 4 * tile_bytes + _round_up(C, 8) * _round_up(C, 128) * 4
    if cache_x:
        need += cache_bytes
    vmem_limit = int(min(56 << 20, max(32 << 20, int(need * 1.5) + (2 << 20))))

    flops = 4 * B * C * C * N_pad                              # two CxNxC matmuls
    bytes_accessed = (2 if cache_x else 3) * B * C * N_pad * itemsize
    cost = pl.CostEstimate(flops=flops, transcendentals=B * C * C,
                           bytes_accessed=bytes_accessed)

    out_flat = pl.pallas_call(
        kernel,
        out_shape=jax.ShapeDtypeStruct((B, C, N_pad), x.dtype),
        grid_spec=pltpu.PrefetchScalarGridSpec(
            num_scalar_prefetch=0,
            grid=(B, 2, nt),
            in_specs=[
                # gamma scalar parameter, kept whole in SMEM.
                pl.BlockSpec(memory_space=pltpu.MemorySpace.SMEM),
                # (C, tn) tile of the current batch element (batch squeezed).
                pl.BlockSpec((None, C, tn), x_index),
            ],
            # Phase 0 parks the output on block (b, 0, 0); Pallas only writes a
            # block back when its index changes, and phase-1 t=0 fully
            # overwrites that block before any flush. Phase 1 then walks the N
            # tiles, writing each lane-dense block exactly once.
            out_specs=pl.BlockSpec((None, C, tn), lambda b, p, t: (b, 0, t * p)),
            scratch_shapes=scratch,
        ),
        compiler_params=pltpu.CompilerParams(
            dimension_semantics=("parallel", "arbitrary", "arbitrary"),
            vmem_limit_bytes=vmem_limit,
        ),
        cost_estimate=cost,
    )(gamma, x_flat)

    if N_pad != N:
        out_flat = out_flat[:, :, :N]
    return out_flat.reshape(B, C, H, W)


def cam_reference(x, gamma):
    """Pure-JAX reference mirroring the PyTorch forward (HIGHEST precision)."""
    B, C, H, W = x.shape
    q = x.reshape(B, C, -1).astype(jnp.float32)                # (B, C, N)
    energy = jnp.einsum("bcn,bkn->bck", q, q,
                        precision=jax.lax.Precision.HIGHEST)   # (B, C, C)
    energy_new = jnp.max(energy, axis=-1, keepdims=True) - energy
    attn = jax.nn.softmax(energy_new, axis=-1)
    out = jnp.einsum("bck,bkn->bcn", attn, q,
                     precision=jax.lax.Precision.HIGHEST)      # (B, C, N)
    out = out.reshape(B, C, H, W)
    return (jnp.asarray(gamma, jnp.float32).reshape(())[()] * out
            + x.astype(jnp.float32)).astype(x.dtype)


if __name__ == "__main__":
    key = jax.random.PRNGKey(0)
    B, C, H, W = 2, 4, 16, 16
    x = jax.random.normal(key, (B, C, H, W), dtype=jnp.float32)

    # Parameter as defined in __init__: gamma = Parameter(torch.zeros(1))
    gamma0 = jnp.zeros((1,), dtype=jnp.float32)
    gamma1 = jnp.array([0.5], dtype=jnp.float32)

    # Tiled two-phase path with the VMEM x-cache (N = 256 -> 2 tiles of 128).
    out = jax.block_until_ready(cam_module(x, gamma0, tile_n=128))
    ref = cam_reference(x, gamma0)
    assert out.shape == (B, C, H, W)
    assert jnp.allclose(out, ref, atol=1e-3, rtol=1e-3)

    # Nonzero gamma so the attention path actually contributes to the output.
    out2 = jax.block_until_ready(cam_module(x, gamma1, tile_n=128))
    ref2 = cam_reference(x, gamma1)
    assert jnp.allclose(out2, ref2, atol=1e-3, rtol=1e-3)

    # HBM re-streaming fallback (x-cache disabled) must agree as well.
    out3 = jax.block_until_ready(
        cam_module(x, gamma1, tile_n=128, cache_budget_bytes=0))
    assert jnp.allclose(out3, ref2, atol=1e-3, rtol=1e-3)

    # Non-128-multiple spatial size exercises the zero-padding + default
    # tile-picker (single tile) path.
    x4 = jax.random.normal(jax.random.PRNGKey(1), (1, 4, 10, 10), jnp.float32)
    g4 = jnp.array([0.7], dtype=jnp.float32)
    out4 = jax.block_until_ready(cam_module(x4, g4))
    ref4 = cam_reference(x4, g4)
    assert out4.shape == x4.shape
    assert jnp.allclose(out4, ref4, atol=1e-3, rtol=1e-3)

    print("KERNEL_OK")
</pallas_src>

<mosaic_0001>
module attributes {stable_mosaic.version = 11 : i64} {
  func.func @_cam_kernel(%arg0: i32, %arg1: i32, %arg2: i32, %arg3: memref<1xf32, #tpu.memory_space<smem>>, %arg4: memref<1x4x128xf32, #tpu.memory_space<vmem>>, %arg5: memref<1x4x128xf32, #tpu.memory_space<vmem>>, %arg6: memref<4x4xf32, #tpu.memory_space<vmem>>, %arg7: memref<2x4x128xf32, #tpu.memory_space<vmem>>) attributes {dimension_semantics = [#tpu.dimension_semantics<parallel>, #tpu.dimension_semantics<arbitrary>, #tpu.dimension_semantics<arbitrary>], iteration_bounds = array<i64: 2, 2, 2>, scalar_prefetch = 0 : i64, scratch_operands = 2 : i64, tpu.core_type = #tpu.core_type<tc>, window_params = [{transform_indices = @transform_0, window_bounds = array<i64: 1>}, {transform_indices = @transform_1, window_bounds = array<i64: 1, 4, 128>}, {transform_indices = @transform_2, window_bounds = array<i64: 1, 4, 128>}]} {
    %c0_i32 = arith.constant 0 : i32
    %0 = arith.cmpi eq, %arg1, %c0_i32 : i32
    %c0_i32_0 = arith.constant 0 : i32
    %1 = arith.cmpi eq, %arg2, %c0_i32_0 : i32
    %2 = arith.andi %0, %1 : i1
    %3 = arith.extui %2 : i1 to i32
    %c0_i32_1 = arith.constant 0 : i32
    %4 = arith.cmpi ne, %3, %c0_i32_1 : i32
    scf.if %4 {
      %cst = arith.constant 0.000000e+00 : f32
      %16 = vector.broadcast %cst : f32 to vector<4x4xf32>
      %c0 = arith.constant 0 : index
      %c0_8 = arith.constant 0 : index
      %17 = vector.load %arg6[%c0, %c0_8] : memref<4x4xf32, #tpu.memory_space<vmem>>, vector<4x4xf32>
      tpu.vector_store %arg6[%c0, %c0_8], %16 {strides = array<i32>} : memref<4x4xf32, #tpu.memory_space<vmem>>, vector<4x4xf32>,
    } else {
    }
    %c0_i32_2 = arith.constant 0 : i32
    %5 = arith.cmpi eq, %arg1, %c0_i32_2 : i32
    %6 = arith.extui %5 : i1 to i32
    %c0_i32_3 = arith.constant 0 : i32
    %7 = arith.cmpi ne, %6, %c0_i32_3 : i32
    scf.if %7 {
      %c0 = arith.constant 0 : index
      %c0_8 = arith.constant 0 : index
      %c0_9 = arith.constant 0 : index
      %16 = vector.load %arg4[%c0, %c0_8, %c0_9] : memref<1x4x128xf32, #tpu.memory_space<vmem>>, vector<1x4x128xf32>
      %17 = vector.shape_cast %16 : vector<1x4x128xf32> to vector<4x128xf32>
      %18 = arith.index_cast %arg2 : i32 to index
      %c0_10 = arith.constant 0 : index
      %c0_11 = arith.constant 0 : index
      %19 = vector.load %arg7[%18, %c0_10, %c0_11] : memref<2x4x128xf32, #tpu.memory_space<vmem>>, vector<1x4x128xf32>
      %20 = vector.shape_cast %19 : vector<1x4x128xf32> to vector<4x128xf32>
      %21 = vector.shape_cast %17 : vector<4x128xf32> to vector<1x4x128xf32>
      tpu.vector_store %arg7[%18, %c0_10, %c0_11], %21 {strides = array<i32>} : memref<2x4x128xf32, #tpu.memory_space<vmem>>, vector<1x4x128xf32>,
      %c0_12 = arith.constant 0 : index
      %c0_13 = arith.constant 0 : index
      %22 = vector.load %arg6[%c0_12, %c0_13] : memref<4x4xf32, #tpu.memory_space<vmem>>, vector<4x4xf32>
      %cst = arith.constant dense<0.000000e+00> : vector<4x4xf32>
      %23 = tpu.matmul %17, %17, %cst {dimension_numbers = #tpu.dot_dimension_numbers<[1], [1], [0], [0], [0, 0, 1, 0], [], []>, precision = #tpu.contract_precision<fp32>} : vector<4x128xf32>, vector<4x128xf32>, vector<4x4xf32> -> vector<4x4xf32>
      %24 = arith.addf %22, %23 : vector<4x4xf32>
      %c0_14 = arith.constant 0 : index
      %c0_15 = arith.constant 0 : index
      %25 = vector.load %arg6[%c0_14, %c0_15] : memref<4x4xf32, #tpu.memory_space<vmem>>, vector<4x4xf32>
      tpu.vector_store %arg6[%c0_14, %c0_15], %24 {strides = array<i32>} : memref<4x4xf32, #tpu.memory_space<vmem>>, vector<4x4xf32>,
    } else {
    }
    %c0_i32_4 = arith.constant 0 : i32
    %8 = arith.cmpi eq, %arg1, %c0_i32_4 : i32
    %c1_i32 = arith.constant 1 : i32
    %9 = arith.cmpi eq, %arg2, %c1_i32 : i32
    %10 = arith.andi %8, %9 : i1
    %11 = arith.extui %10 : i1 to i32
    %c0_i32_5 = arith.constant 0 : i32
    %12 = arith.cmpi ne, %11, %c0_i32_5 : i32
    scf.if %12 {
      %c0 = arith.constant 0 : index
      %c0_8 = arith.constant 0 : index
      %16 = vector.load %arg6[%c0, %c0_8] : memref<4x4xf32, #tpu.memory_space<vmem>>, vector<4x4xf32>
      %cst = arith.constant dense<0x7F800000> : vector<4xf32>
      %17 = vector.multi_reduction <minimumf>, %16, %cst [1] : vector<4x4xf32> to vector<4xf32>
      %18 = vector.shape_cast %17 : vector<4xf32> to vector<4x1xf32>
      %19 = vector.broadcast %18 : vector<4x1xf32> to vector<4x4xf32>
      %20 = arith.subf %19, %16 : vector<4x4xf32>
      %21 = math.exp %20 : vector<4x4xf32>
      %cst_9 = arith.constant dense<0.000000e+00> : vector<4xf32>
      %22 = vector.multi_reduction <add>, %21, %cst_9 [1] : vector<4x4xf32> to vector<4xf32>
      %23 = vector.shape_cast %22 : vector<4xf32> to vector<4x1xf32>
      %24 = vector.broadcast %23 : vector<4x1xf32> to vector<4x4xf32>
      %25 = arith.divf %21, %24 : vector<4x4xf32>
      %c0_10 = arith.constant 0 : index
      %c0_11 = arith.constant 0 : index
      %26 = vector.load %arg6[%c0_10, %c0_11] : memref<4x4xf32, #tpu.memory_space<vmem>>, vector<4x4xf32>
      tpu.vector_store %arg6[%c0_10, %c0_11], %25 {strides = array<i32>} : memref<4x4xf32, #tpu.memory_space<vmem>>, vector<4x4xf32>,
    } else {
    }
    %c1_i32_6 = arith.constant 1 : i32
    %13 = arith.cmpi eq, %arg1, %c1_i32_6 : i32
    %14 = arith.extui %13 : i1 to i32
    %c0_i32_7 = arith.constant 0 : i32
    %15 = arith.cmpi ne, %14, %c0_i32_7 : i32
    scf.if %15 {
      %16 = arith.index_cast %arg2 : i32 to index
      %c0 = arith.constant 0 : index
      %c0_8 = arith.constant 0 : index
      %17 = vector.load %arg7[%16, %c0, %c0_8] : memref<2x4x128xf32, #tpu.memory_space<vmem>>, vector<1x4x128xf32>
      %18 = vector.shape_cast %17 : vector<1x4x128xf32> to vector<4x128xf32>
      %c0_9 = arith.constant 0 : index
      %c0_10 = arith.constant 0 : index
      %19 = vector.load %arg6[%c0_9, %c0_10] : memref<4x4xf32, #tpu.memory_space<vmem>>, vector<4x4xf32>
      %cst = arith.constant dense<0.000000e+00> : vector<4x128xf32>
      %20 = tpu.matmul %19, %18, %cst {dimension_numbers = #tpu.dot_dimension_numbers<[1], [0], [0], [1], [0, 0, 1, 1], [], []>, precision = #tpu.contract_precision<fp32>} : vector<4x4xf32>, vector<4x128xf32>, vector<4x128xf32> -> vector<4x128xf32>
      %c0_11 = arith.constant 0 : index
      %21 = memref.load %arg3[%c0_11] : memref<1xf32, #tpu.memory_space<smem>>
      %22 = vector.broadcast %21 : f32 to vector<4x128xf32>
      %23 = arith.mulf %22, %20 : vector<4x128xf32>
      %24 = arith.addf %23, %18 : vector<4x128xf32>
      %c0_12 = arith.constant 0 : index
      %c0_13 = arith.constant 0 : index
      %c0_14 = arith.constant 0 : index
      %25 = vector.load %arg5[%c0_12, %c0_13, %c0_14] : memref<1x4x128xf32, #tpu.memory_space<vmem>>, vector<1x4x128xf32>
      %26 = vector.shape_cast %25 : vector<1x4x128xf32> to vector<4x128xf32>
      %27 = vector.shape_cast %24 : vector<4x128xf32> to vector<1x4x128xf32>
      tpu.vector_store %arg5[%c0_12, %c0_13, %c0_14], %27 {strides = array<i32>} : memref<1x4x128xf32, #tpu.memory_space<vmem>>, vector<1x4x128xf32>,
    } else {
    }
    return
  }
  func.func @transform_0(%arg0: i32, %arg1: i32, %arg2: i32) -> i32 {
    %c0_i32 = arith.constant 0 : i32
    %c0_i32_0 = arith.constant 0 : i32
    return %c0_i32 : i32
  }
  func.func @transform_1(%arg0: i32, %arg1: i32, %arg2: i32) -> (i32, i32, i32) {
    %c1_i32 = arith.constant 1 : i32
    %0 = arith.subi %c1_i32, %arg1 : i32
    %1 = arith.muli %arg2, %0 : i32
    %c1_i32_0 = arith.constant 1 : i32
    %2 = arith.muli %c1_i32_0, %arg1 : i32
    %3 = arith.addi %1, %2 : i32
    %c0_i32 = arith.constant 0 : i32
    %c0_i32_1 = arith.constant 0 : i32
    return %arg0, %c0_i32, %3 : i32, i32, i32
  }
  func.func @transform_2(%arg0: i32, %arg1: i32, %arg2: i32) -> (i32, i32, i32) {
    %0 = arith.muli %arg2, %arg1 : i32
    %c0_i32 = arith.constant 0 : i32
    %c0_i32_0 = arith.constant 0 : i32
    return %arg0, %c0_i32, %0 : i32, i32, i32
  }
}

</mosaic_0001>

<bundles_post_ra>
// kernel: tpu_custom_call.1
= control target key start
LH: loop header
LB: loop body
LE: loop exit
PB: predicated region body
PF: predicated region fallthrough
CT: control target
= control target key end

     0   :  { %s1991_s0 = inlined_call_operand.<no memory space> [shape: f32[1], index: 0, kind: input, shape index: {}]   ;;  %s1992_s1 = inlined_call_operand.hbm [shape: f32[2,4,256], index: 1, kind: input, shape index: {}]   ;;  %s1993_s2 = inlined_call_operand.hbm [shape: f32[2,4,256], index: 2, kind: output, shape index: {}]  }
   0x1   :  { %7 = sst [smem:[#allocation4]] %s1991_s0 }
   0x2   :  { %8 = vsyncpa [#allocation6], 0 }
   0x3   :  { %10 = vsyncpa [#allocation6 + $0x1], 0 }
   0x4   :  { %11 = vsyncpa [#allocation7], 0 }
   0x5   :  { %13 = vsyncpa [#allocation7 + $0x1], 0  ;;  %s1698_s11 = smov 0   ;;  %s1700_s12 = smov 0  }
   0x6   :  { %s1702_s13 = smov 0   ;;  %s1704_s14 = smov 0  }
   0x7   :  { %s1706_s15 = smov 0   ;;  %s1708_s16 = smov 0  }
   0x8   :  { %s1710_s17 = smov 0   ;;  %s1712_s18 = smov 0  }
   0x9   :  { %s1714_s0 = smov 0   ;;  %s1716_s19 = smov 0  }
   0xa   :  { %s1718_s20 = smov 0   ;;  %s1720_s21 = smov 0  }
   0xb   :  { %s1722_s22 = smov 0  }
   0xc LB: > { %2000 = sst [smem:[#allocation11_spill]] %s1663_s20  ;;  %s1994_s23 = sadd.s32 4294967295, %s1671_s22   ;;  %s1671_s22 = sphi %s1722_s22, %s19_s22   ;;  %s1667_s21 = sphi %s1720_s21, %s2029_s21   ;;  %s1663_s20 = sphi %s1718_s20, %s2018_s20   ;;  %s1659_s19 = sphi %s1716_s19, %s2028_s19   ;;  %s1655_s0 = sphi %s1714_s0, %s2027_s0   ;;  %s1651_s18 = sphi %s1712_s18, %s2016_s18   ;;  %s1647_s17 = sphi %s1710_s17, %s2026_s17   ;;  %s1643_s16 = sphi %s1708_s16, %s2025_s16   ;;  %s1639_s15 = sphi %s1706_s15, %s2024_s15   ;;  %s1635_s14 = sphi %s1704_s14, %s2023_s14   ;;  %s1631_s13 = sphi %s1702_s13, %s2022_s13   ;;  %s1627_s12 = sphi %s1700_s12, %s2021_s12   ;;  %s1623_s11 = sphi %s1698_s11, %s2020_s11  }
   0xd   : > { %s31_s25 = sadd.s32 1, %s1659_s19  ;;  %s34_s26 = sadd.s32 1, %s1663_s20 }
   0xe   : > { %p32_p0 = scmp.ge.s32.totalorder %s31_s25, 2  ;;  %s38_s27 = sadd.s32 1, %s1667_s21 }
   0xf   : > { %s63_s28 = ssub.s32 1, %s1663_s20  ;;  %s74_s29 = sadd.s32 1, %s1643_s16 }
  0x10   : > { %s2031_s25 = smov (%p32_p0, %s31_s25), 0  ;;  %s2033_s26 = smov (!%p32_p0, %s34_s26), %s1663_s20 }
  0x11   : > { %2001 = sst [smem:[#allocation12_spill]] %s2031_s25  ;;  %s64_s30 = smul.u32 %s1659_s19, %s63_s28 }
  0x12   : > { %p81_p1 = scmp.ne.s32.totalorder %s1643_s16, %s1639_s15  ;;  %p36_p2 = scmp.ge.s32.totalorder %s2033_s26, 2 }
  0x13   : > { %p82_p3 = scmp.eq.s32.totalorder %s1671_s22, 0  ;;  %s1778_s3 = sadd.s32 %s1663_s20, %s64_s30 }
  0x14   : > { %p87_p4 = scmp.ne.s32.totalorder %s1639_s15, %s1635_s14  ;;  %s2035_s26 = smov (%p36_p2, %s2033_s26), 0 }
  0x15   : > { %2002 = sst [smem:[#allocation13_spill]] %s2035_s26  ;;  %s2037_s27 = smov (!%p36_p2, %s38_s27), %s1667_s21 }
  0x16   : > { %s66_s4 = ssub.s32 1, %s2035_s26  ;;  %p1786_p5 = por %p82_p3, %p81_p1 }
  0x17   : > { %p40_p6 = scmp.ge.s32.totalorder %s2037_s27, 2  ;;  %s67_s6 = smul.u32 %s66_s4, %s2031_s25 }
  0x18   : > { %p88_p7 = scmp.eq.s32.totalorder %s1994_s23, 0  ;;  %s97_s7 = smul.u32 %s1659_s19, %s1663_s20 }
  0x19   : > { %s2039_s27 = smov (%p40_p6, %s2037_s27), 0  ;;  %s68_s8 = sadd.s32 %s67_s6, %s2035_s26 }
  0x1a   : > { %2004 = sst [smem:[#allocation14_spill]] %s2039_s27  ;;  %p1798_p8 = por %p88_p7, %p87_p4 }
  0x1b   : > { %s69_s10 = ssub.s32 %s1667_s21, %s2039_s27  ;;  %s70_s14 = ssub.s32 %s1778_s3, %s68_s8 }
  0x1c   : > { %s71_s28 = sor.u32 %s70_s14, %s69_s10  ;;  %s98_s30 = smul.u32 %s2035_s26, %s2031_s25 }
  0x1d   : > { %p72_p9 = scmp.eq.s32.totalorder %s71_s28, 0  ;;  %s104_s4 = sadd.s32 1, %s1631_s13 }
  0x1e   : > { %s100_s24 = ssub.s32 %s97_s7, %s98_s30  ;;  %p114_p10 = scmp.ne.s32.totalorder %s1631_s13, %s1627_s12 }
  0x1f   : > { %s1811_s23 = scalar_select %p72_p9, %s1643_s16, %s74_s29  }
  0x20   : > { %s101_s6 = sor.u32 %s100_s24, %s69_s10  ;;  %s2006_s20 = sadd.s32 4294967295, %s1671_s22  }
  0x21   : > { %p115_p11 = scmp.eq.s32.totalorder %s2006_s20, 7  ;;  %p102_p12 = scmp.eq.s32.totalorder %s101_s6, 0 }
  0x22   : > { %p120_p13 = scmp.ne.s32.totalorder %s1627_s12, %s1623_s11  ;;  %s2008_s14 = sadd.s32 4294967294, %s1671_s22  }
  0x23   : > { %p1817_p0 = por %p115_p11, %p114_p10  ;;  %p121_p1 = scmp.eq.s32.totalorder %s2008_s14, 7 }
  0x24   : > { %s1824_s28 = scalar_select %p102_p12, %s1631_s13, %s104_s4  }
  0x25   : > { %s2007_s8 = scalar_select %p1817_p0, 1, 0 }
  0x26   : > { %p1826_p2 = por %p121_p1, %p120_p13  ;;  %p1388_p3 = scmp.lt.s32.totalorder %s1671_s22, 8 }
  0x27   : > { %s144_s24 = sand.u32 1, %s1643_s16   ;;  %s1269_s29 = sshll.u32 %s1667_s21, 1 }
  0x28   : > { %s2009_s7 = scalar_select %p1826_p2, 1, 0 }
  0x29   : > { %s1268_s20 = sshll.u32 %s144_s24, 2  ;;  %s156_s10 = sadd.s32 %s1269_s29, %s1778_s3 }
  0x2a   : > { %s148_s30 = scalar_lea.vmem [#allocation5], %s1268_s20  ;;  %s1270_s27 = sshll.u32 %s156_s10, 6 }
  0x2b   : > { %s160_s6 = sshll.u32 %s148_s30, 4  ;;  %s1839_s14 = scalar_lea.hbm %s1992_s1, %s1270_s27  ;;  %s1834_s6 = int_to_ptr.vmem [resolvable:$true] %s160_s6 }
  0x2c   : > { %p1843_p4 = pnand %p1388_p3, %p1786_p5  ;;  %s145_s3 = scalar_lea.sflag [#allocation6], %s144_s24 }
  0x2d   : > { %s1503_s20 = scalar_lea.hbm %s1839_s14, 64  ;;  %s1508_s27 = scalar_lea.hbm %s1992_s1, 256 }
  0x2e   : > { %p1504_p9 = scmp.ne.s32.totalorder %s1839_s14, %s1503_s20  ;;  %p1505_p10 = pneg %p1843_p4 }
  0x2f   : > { %p1509_p5 = scmp.lt.u32.totalorder %s1839_s14, %s1992_s1  ;;  %p1510_p13 = scmp.lt.u32.totalorder %s1508_s27, %s1503_s20 }
  0x30   : > { %p1506_p11 = pnand %p1505_p10, %p1504_p9  ;;  %p1512_p3 = scmp.lt.u32.totalorder %s1503_s20, %s1839_s14 }
  0x31   : > { %p1511_p1 = por %p1510_p13, %p1509_p5 }
  0x32   : > { %p1507_p12 = pneg %p1506_p11 }
  0x33   : > { %p1513_p6 = por %p1512_p3, %p1511_p1 }
  0x35   : > { %p1514_p7 = pnand %p1513_p6, %p1507_p12 }
  0x37   : > { %1517 = shalt.err (!%p1514_p7)
}
  0x38   : > { %s1518_s24 = scalar_lea.vmem %s1834_s6, 64  ;;  %s1673_s10 = smov [#allocation5]  }
  0x39   : > { %p1519_p9 = scmp.ne.s32.totalorder %s1834_s6, %s1518_s24  ;;  %s1523_s30 = sshll.u32 %s1673_s10, 4  ;;  %s1524_s30 = int_to_ptr.vmem [resolvable:$false] %s1523_s30 }
  0x3a   : > { %s1525_s25 = scalar_lea.vmem %s1524_s30, 128  ;;  %p1526_p0 = scmp.lt.s32.totalorder %s1834_s6, %s1524_s30 }
  0x3b   : > { %p1521_p11 = pnand %p1519_p9, %p1505_p10  ;;  %p1527_p5 = scmp.lt.s32.totalorder %s1525_s25, %s1518_s24 }
  0x3d   : > { %p1522_p2 = pneg %p1521_p11  ;;  %p1528_p13 = por %p1527_p5, %p1526_p0 }
  0x3f   : > { %p1529_p1 = pnand %p1528_p13, %p1522_p2 }
  0x41   : > { %1532 = shalt.err (!%p1529_p1)
}
  0x42   : > { %1383 = dma.hbm_to_vmem [thread:$0]  (!%p1843_p4), %s1839_s14, 64, %s1834_s6, %s145_s3  }
  0x43   : > { %p2011_p6 = scmp.lt.s32.totalorder %s1671_s22, 9  ;;  %p2012_p7 = scmp.ge.s32.totalorder %s1671_s22, 1 }
  0x45   : > { %p166_p10 = pnand %p2012_p7, %p2011_p6 }
  0x46   : > { %s171_s20 = sand.u32 (!%p166_p10), 1, %s1639_s15  }
  0x47   : > { %169 = sbr.rel (%p166_p10) target bundleno = 933 (0x3a5), region = 28  ;;  %s1272_s26 = sshll.u32 (!%p166_p10), %s171_s20, 2 }
  0x48   : > { %s172_s27 = scalar_lea.sflag (!%p166_p10), [#allocation6], %s171_s20  ;;  %s175_s5 = scalar_lea.vmem (!%p166_p10), [#allocation5], %s1272_s26 }
  0x4e   : > { %1614 = dma.done.wait (%p1798_p8), %s172_s27, 64  }
  0x4f   : > { %1616 = vsyncadd (%p1798_p8), %s172_s27, 4294967232  ;;  %s193_s6 = sand.u32 1, %s1627_s12   ;;  %p200_p0 = scmp.eq.s32.totalorder %s1651_s18, 0 }
  0x50   : > { %s1887_s14 = sshll.u32 %s193_s6, 2  ;;  %p201_p2 = scmp.eq.s32.totalorder %s1647_s17, 0 }
  0x51   : > { %s195_s4 = scalar_lea.vmem [#allocation8], %s1887_s14 }
  0x52   : > { %p202_p4 = pnand %p201_p2, %p200_p0 }
  0x53   : > { %vm206_vm0 = vcmask (!%p202_p4), 27648   ;;  %v1674_v0 = vmov (!%p202_p4), 0.0  }
  0x54   : > { %205 = sbr.rel (%p202_p4) target bundleno = 91 (0x5b), region = 36  ;;  %207 = vst.msk [vmem:[#allocation2] sm:$0xf] (!%p202_p4), %vm206_vm0, %v1674_v0 }
  0x5b PF: > { %p1274_p8 = scmp.ne.s32.totalorder %s1651_s18, 0 }
  0x5c   : > { %v211_v1 = vld [vmem:[%s175_s5] sm:$0xf] (!%p1274_p8)  ;;  %s1275_s9 = sshll.u32 (!%p1274_p8), %s1647_s17, 2  ;;  %v1675_v2 = vmov (!%p1274_p8), 0.0   ;;  %vm1676_vm1 = vmmov (!%p1274_p8), 0   ;;  %vm663_vm2 = vcmask (!%p1274_p8), 27648  }
  0x5d   : > { %210 = sbr.rel (%p1274_p8) target bundleno = 331 (0x14b), region = 40  ;;  %1307 = vmatprep.subr.mxu0 (!%p1274_p8), %v1675_v2  ;;  %v217_v3 = vand.u32 (!%p1274_p8), 4294901760, %v211_v1  ;;  %1312 = vmatprep.subr.mxu1 (!%p1274_p8), %v1675_v2  ;;  %s213_s3 = scalar_lea.vmem (!%p1274_p8), [#allocation3], %s1275_s9  ;;  %v215_v22 = vld [vmem:[#allocation2] sm:$0xf] (!%p1274_p8) }
  0x5e   : > { %214 = vst [vmem:[%s213_s3] sm:$0xf] (!%p1274_p8), %v211_v1  ;;  %1309 = vmatprep.mubr.msk.f32.mxu0 (!%p1274_p8), %vm1676_vm1, %v1675_v2  ;;  %1314 = vmatprep.mubr.msk.f32.mxu1 (!%p1274_p8), %vm1676_vm1, %v1675_v2 }
  0x5f   : > { %1308 = vmatpush3.xpose.msra.mxu0 (!%p1274_p8), %v217_v3  ;;  %v283_v4 = vsub.f32 (!%p1274_p8), %v211_v1, %v217_v3 }
  0x60   : > { %1317 = vmatprep.subr.mxu0 (!%p1274_p8), %v1675_v2 }
  0x61   : > { %v284_v5 = vand.u32 (!%p1274_p8), 4294901760, %v283_v4 }
  0x63   : > { %v285_v6 = vsub.f32 (!%p1274_p8), %v283_v4, %v284_v5 }
  0x65   : > { %v286_v7 = vand.u32 4294901760, %v285_v6 }
  0x67   : > { %1313 = vmatpush3.xpose.msra.mxu1 %v286_v7  ;;  %1310 = vmatmul.mubr.f32.vlgmr.msra.gmra.mrb[0].mxu0 %v286_v7 }
  0x68   : > { %1318 = vmatpush3.xpose.msra.mxu0 %v283_v4  ;;  %1322 = vmatprep.subr.mxu1 %v1675_v2 }
  0x69   : > { %1319 = vmatprep.mubr.msk.f32.mxu0 %vm1676_vm1, %v1675_v2  ;;  %1327 = vmatprep.subr.mxu0 %v1675_v2 }
  0x6a   : > { %1315 = vmatmul.mubr.f32.vlgmr.msra.gmra.mrb[0].mxu1 %v217_v3 }
  0x6b   : > { %1323 = vmatpush3.xpose.msra.mxu1 %v217_v3  ;;  %1320 = vmatmul.mubr.f32.vlgmr.msra.gmra.mrb[2].mxu0 %v283_v4 }
  0x6c   : > { %1324 = vmatprep.mubr.msk.f32.mxu1 %vm1676_vm1, %v1675_v2  ;;  %1328 = vmatpush3.xpose.msra.mxu0 %v284_v5 }
  0x6d   : > { %1332 = vmatprep.subr.mxu1 %v1675_v2  ;;  %1329 = vmatprep.mubr.msk.f32.mxu0 %vm1676_vm1, %v1675_v2 }
  0x6e   : > { %1325 = vmatmul.mubr.f32.vlgmr.msra.gmra.mrb[2].mxu1 %v284_v5 }
  0x6f   : > { %1333 = vmatpush3.xpose.msra.mxu1 %v217_v3  ;;  %1330 = vmatmul.mubr.f32.vlgmr.msra.gmra.mrb[4].mxu0 %v217_v3 }
  0x70   : > { %1334 = vmatprep.mubr.msk.f32.mxu1 %vm1676_vm1, %v1675_v2 }
  0x72   : > { %1335 = vmatmul.mubr.f32.vlgmr.msra.gmra.mrb[4].mxu1 %v217_v3 }
 0x13a   : > { %v288_v8 = vpop.f32.mrb[0].mxu0 }
 0x13b   : > { %v1311_v9 = vpop.f32.mrb[1].mxu0 }
 0x13d   : > { %v364_v10 = vpop.f32.mrb[0].mxu1 }
 0x13e   : > { %v365_v11 = vadd.f32 %v364_v10, %v288_v8  ;;  %v1316_v12 = vpop.f32.mrb[1].mxu1  ;;  %v438_v13 = vpop.f32.mrb[2].mxu0 }
 0x13f   : > { %v1321_v14 = vpop.f32.mrb[3].mxu0 }
 0x140   : > { %v439_v15 = vadd.f32 %v438_v13, %v365_v11 }
 0x141   : > { %v512_v16 = vpop.f32.mrb[2].mxu1 }
 0x142   : > { %v513_v17 = vadd.f32 %v512_v16, %v439_v15  ;;  %v1326_v18 = vpop.f32.mrb[3].mxu1  ;;  %v586_v19 = vpop.f32.mrb[4].mxu0 }
 0x143   : > { %v1331_v20 = vpop.f32.mrb[5].mxu0 }
 0x144   : > { %v587_v21 = vadd.f32 %v586_v19, %v513_v17 }
 0x145   : > { %v658_v23 = vpop.f32.mrb[4].mxu1 }
 0x146   : > { %v659_v24 = vadd.f32 %v658_v23, %v587_v21  ;;  %v1336_v25 = vpop.f32.mrb[5].mxu1 }
 0x148   : > { %v662_v26 = vadd.f32 %v659_v24, %v215_v22 }
 0x14a   : > { %664 = vst.msk [vmem:[#allocation2] sm:$0xf] %vm663_vm2, %v662_v26 }
 0x14b PF: > { %p665_p12 = scmp.eq.s32.totalorder %s1647_s17, 1 }
 0x14d   : > { %p666_p3 = pnand %p665_p12, %p200_p0 }
 0x14e   : > { %vm671_vm3 = vcmask (!%p666_p3), 27648  }
 0x14f   : > { %669 = sbr.rel (%p666_p3) target bundleno = 653 (0x28d), region = 44 }
 0x151   : > { %v670_v27 = vld [vmem:[#allocation2] sm:$0xf] (!%p666_p3) }
 0x152   : > { %v672_v28 = vsel (!%p666_p3), %vm671_vm3, %v670_v27, inf }
 0x153   : > { %673 = vmin.xlane.f32.xlu0 (!%p666_p3), %v672_v28 }
 0x1e0   : > { %v674_v29 = vpop.xlane.xlu0 %673 }
 0x1e1   : > { %v675_v30 = vsub.f32 %v674_v29, %v670_v27 }
 0x1e3   : > { %v676_v31 = vmul.f32 1.442695, %v675_v30 }
 0x1e5   : > { %1499 = vpow2.f32 %v676_v31 }
 0x1ef   : > { %v1500_v32 = vpop.eup %1499 }
 0x1f0   : > { %v678_v33 = vsel %vm671_vm3, %v1500_v32, 0.0 }
 0x1f1   : > { %679 = vadd.xlane.f32.xlu0 %v678_v33 }
 0x27e   : > { %v680_v34 = vpop.xlane.xlu0 %679 }
 0x27f   : > { %1501 = vrcp.f32 %v680_v34 }
 0x289   : > { %v1502_v35 = vpop.eup %1501 }
 0x28a   : > { %v682_v36 = vmul.f32 %v1502_v35, %v1500_v32 }
 0x28c   : > { %683 = vst.msk [vmem:[#allocation2] sm:$0xf] %vm671_vm3, %v682_v36 }
 0x28d PF: > { %p1276_p9 = scmp.ne.s32.totalorder %s1651_s18, 1 }
 0x28e   : > { %s1277_s29 = sshll.u32 (!%p1276_p9), %s1647_s17, 2  ;;  %vm696_vm4 = vcmask (!%p1276_p9), 1043456   ;;  %v1677_v38 = vmov (!%p1276_p9), 0.0   ;;  %vm1678_vm5 = vmmov (!%p1276_p9), 0   ;;  %vm692_vm6 = vcmask (!%p1276_p9), 31744   ;;  %s1146_s10 = sld [smem:[#allocation4]] (!%p1276_p9) }
 0x28f   : > { %687 = sbr.rel (%p1276_p9) target bundleno = 906 (0x38a), region = 48  ;;  %1352 = vmatprep.subr.mxu0 (!%p1276_p9), %v1677_v38  ;;  %1354 = vmatprep.mubr.msk.f32.mxu0 (!%p1276_p9), %vm1678_vm5, %v1677_v38  ;;  %s689_s24 = scalar_lea.vmem (!%p1276_p9), [#allocation3], %s1277_s29 }
 0x290   : > { %v690_v39 = vld [vmem:[%s689_s24] sm:$0xf] (!%p1276_p9)  ;;  %1337 = vmatprep.subr.mxu1 (!%p1276_p9), %v1677_v38  ;;  %1339 = vmatprep.mubr.msk.f32.mxu1 (!%p1276_p9), %vm1678_vm5, %v1677_v38 }
 0x291   : > { %v698_v41 = vsel (!%p1276_p9), %vm696_vm4, %v690_v39, 0 }
 0x292   : > { %v701_v43 = vand.u32 (!%p1276_p9), 4294901760, %v698_v41 }
 0x293   : > { %v691_v37 = vld [vmem:[#allocation2] sm:$0xf] (!%p1276_p9) }
 0x294   : > { %v694_v40 = vsel (!%p1276_p9), %vm692_vm6, %v691_v37, 0  ;;  %v778_v45 = vsub.f32 (!%p1276_p9), %v698_v41, %v701_v43  ;;  %1353 = vmatpush3.msra.mxu0 (!%p1276_p9), %v701_v43  ;;  %1338 = vmatpush3.msra.mxu1 (!%p1276_p9), %v701_v43  ;;  %v1147_v55 = vstv (!%p1276_p9), %s1146_s10 }
 0x295   : > { %v766_v42 = vand.u32 (!%p1276_p9), 4294901760, %v694_v40  ;;  %1342 = vmatprep.subr.mxu1 (!%p1276_p9), %v1677_v38  ;;  %1357 = vmatprep.subr.mxu0 (!%p1276_p9), %v1677_v38 }
 0x296   : > { %v779_v47 = vand.u32 4294901760, %v778_v45 }
 0x297   : > { %v767_v44 = vsub.f32 %v694_v40, %v766_v42 }
 0x298   : > { %v780_v49 = vsub.f32 %v778_v45, %v779_v47 }
 0x299   : > { %v768_v46 = vand.u32 4294901760, %v767_v44 }
 0x29a   : > { %v781_v51 = vand.u32 4294901760, %v780_v49 }
 0x29b   : > { %1355 = vmatmul.mubr.f32.vlgmr.msra.gmra.mrb[0].mxu0 %v768_v46  ;;  %v769_v48 = vsub.f32 %v767_v44, %v768_v46 }
 0x29c   : > { %1358 = vmatpush3.msra.mxu0 %v779_v47  ;;  %1359 = vmatprep.mubr.msk.f32.mxu0 %vm1678_vm5, %v1677_v38 }
 0x29d   : > { %v770_v50 = vand.u32 4294901760, %v769_v48  ;;  %1362 = vmatprep.subr.mxu0 %v1677_v38 }
 0x29f   : > { %1340 = vmatmul.mubr.f32.vlgmr.msra.gmra.mrb[0].mxu1 %v770_v50 }
 0x2a0   : > { %1343 = vmatpush3.msra.mxu1 %v781_v51  ;;  %1344 = vmatprep.mubr.msk.f32.mxu1 %vm1678_vm5, %v1677_v38 }
 0x2a1   : > { %1347 = vmatprep.subr.mxu1 %v1677_v38 }
 0x2a3   : > { %1360 = vmatmul.mubr.f32.vlgmr.msra.gmra.mrb[0].mxu0 %v766_v42 }
 0x2a4   : > { %1363 = vmatpush3.msra.mxu0 %v701_v43  ;;  %1364 = vmatprep.mubr.msk.f32.mxu0 %vm1678_vm5, %v1677_v38 }
 0x2a7   : > { %1345 = vmatmul.mubr.f32.vlgmr.msra.gmra.mrb[0].mxu1 %v766_v42 }
 0x2a8   : > { %1348 = vmatpush3.msra.mxu1 %v778_v45  ;;  %1349 = vmatprep.mubr.msk.f32.mxu1 %vm1678_vm5, %v1677_v38 }
 0x2ab   : > { %1365 = vmatmul.mubr.f32.vlgmr.msra.gmra.mrb[0].mxu0 %v766_v42 }
 0x2af   : > { %1350 = vmatmul.mubr.f32.vlgmr.msra.gmra.mrb[0].mxu1 %v767_v44 }
 0x37e   : > { %v1142_v52 = vpop.f32.mrb[0].mxu0 }
 0x37f   : > { %v1366_v53 = vpop.f32.mrb[1].mxu0 }
 0x382   : > { %v922_v54 = vpop.f32.mrb[0].mxu1 }
 0x383   : > { %v1367_v56 = vadd.f32 %v1142_v52, %v922_v54  ;;  %v1351_v57 = vpop.f32.mrb[1].mxu1 }
 0x385   : > { %v1148_v58 = vmul.f32 %v1367_v56, %v1147_v55 }
 0x387   : > { %v1149_v59 = vadd.f32 %v1148_v58, %v690_v39 }
 0x389   : > { %1150 = vst [vmem:[%s195_s4] sm:$0xf] %v1149_v59 }
 0x38a PF: > { %s1159_s30 = smul.u32 %s1647_s17, %s1651_s18  ;;  %s1279_s25 = sshll.u32 %s1655_s0, 1 }
 0x38b   : > { %s1168_s20 = sshll.u32 %s195_s4, 4  ;;  %s1152_s29 = scalar_lea.sflag [#allocation7], %s193_s6  ;;  %s1919_s20 = int_to_ptr.vmem [resolvable:$true] %s1168_s20 }
 0x38c   : > { %s1164_s26 = sadd.s32 %s1279_s25, %s1159_s30  ;;  %s1533_s24 = scalar_lea.vmem %s1919_s20, 64 }
 0x38d   : > { %s1280_s27 = sshll.u32 %s1164_s26, 6  ;;  %p1534_p11 = scmp.ne.s32.totalorder %s1919_s20, %s1533_s24 }
 0x38e   : > { %s1166_s3 = scalar_lea.hbm %s1993_s2, %s1280_s27  ;;  %p2013_p5 = scmp.ne.s32.totalorder %s2007_s8, 0 }
 0x38f   : > { %s1679_s17 = smov [#allocation8]  }
 0x390   : > { %p1535_p13 = pnand %p1534_p11, %p2013_p5  ;;  %s1537_s18 = sshll.u32 %s1679_s17, 4  ;;  %s1538_s18 = int_to_ptr.vmem [resolvable:$false] %s1537_s18 }
 0x391   : > { %s1539_s0 = scalar_lea.vmem %s1538_s18, 128  ;;  %p1540_p6 = scmp.lt.s32.totalorder %s1919_s20, %s1538_s18 }
 0x392   : > { %p1536_p1 = pneg %p1535_p13  ;;  %p1541_p7 = scmp.lt.s32.totalorder %s1539_s0, %s1533_s24 }
 0x394   : > { %p1542_p10 = por %p1541_p7, %p1540_p6 }
 0x396   : > { %p1543_p0 = pnand %p1542_p10, %p1536_p1 }
 0x398   : > { %1546 = shalt.err (!%p1543_p0)
}
 0x399   : > { %s1547_s14 = scalar_lea.hbm %s1166_s3, 64  ;;  %s1551_s10 = scalar_lea.hbm %s1993_s2, 256 }
 0x39a   : > { %p1548_p2 = scmp.ne.s32.totalorder %s1166_s3, %s1547_s14  ;;  %p1552_p12 = scmp.lt.u32.totalorder %s1166_s3, %s1993_s2 }
 0x39b   : > { %p1553_p3 = scmp.lt.u32.totalorder %s1551_s10, %s1547_s14  ;;  %p1555_p11 = scmp.lt.u32.totalorder %s1547_s14, %s1166_s3 }
 0x39c   : > { %p1549_p4 = pnand %p1548_p2, %p2013_p5 }
 0x39d   : > { %p1554_p9 = por %p1553_p3, %p1552_p12 }
 0x39e   : > { %p1550_p8 = pneg %p1549_p4 }
 0x39f   : > { %p1556_p13 = por %p1555_p11, %p1554_p9 }
 0x3a1   : > { %p1557_p1 = pnand %p1556_p13, %p1550_p8 }
 0x3a3   : > { %1560 = shalt.err (!%p1557_p1)
}
 0x3a4   : > { %1378 = dma.vmem_to_hbm [thread:$0]  (%p2013_p5), %s1919_s20, 64, %s1166_s3, %s1152_s29  }
 0x3a5 PF: > { %p1389_p6 = scmp.ge.s32.totalorder %s1671_s22, 2  ;;  %s1180_s26 = sand.u32 1, %s1623_s11  }
 0x3a6   : > { %p2014_p7 = scmp.ne.s32.totalorder %s2009_s7, 0  ;;  %s1181_s27 = scalar_lea.sflag [#allocation7], %s1180_s26 }
 0x3a8   : > { %p1385_p10 = pnand %p1389_p6, %p2014_p7 }
 0x3aa   : > { %1618 = dma.done.wait (!%p1385_p10), %s1181_s27, 64  }
 0x3ab   : > { %1620 = vsyncadd (!%p1385_p10), %s1181_s27, 4294967232  ;;  %s19_s22 = sadd.s32 1, %s1671_s22   ;;  %s2016_s18 = sld [smem:[#allocation11_spill]] }
 0x3ac   : > { %p1947_p0 = scmp.ge.s32.totalorder %s19_s22, 10   ;;  %s2017_s8 = sld [smem:[#allocation12_spill]] }
 0x3ad   : > { %s2018_s20 = sld [smem:[#allocation13_spill]]  ;;  %s2019_s7 = sld [smem:[#allocation14_spill]] }
 0x3ae   : > { %s2020_s11 = smov %s1627_s12  ;;  %s2021_s12 = smov %s1631_s13 }
 0x3af   : > { %s2022_s13 = smov %s1824_s28  ;;  %s2023_s14 = smov %s1639_s15 }
 0x3b0   : > { %s2024_s15 = smov %s1643_s16  ;;  %s2025_s16 = smov %s1811_s23 }
 0x3b1   : > { %s2026_s17 = smov %s1659_s19  ;;  %s2027_s0 = smov %s1667_s21 }
 0x3b2   : > { %s2028_s19 = smov %s2017_s8  ;;  %18 = sbr.rel (!%p1947_p0) target bundleno = 12 (0xc), region = 91 }
 0x3b3   : > { %s2029_s21 = smov %s2019_s7 }
 0x3b9   :  { %1186 = vsyncpa [#allocation6], 1 }
 0x3ba   :  { %1188 = vsyncpa [#allocation6 + $0x1], 1 }
 0x3bb   :  { %1189 = vsyncpa [#allocation7], 1 }
 0x3bc   :  { %1191 = vsyncpa [#allocation7 + $0x1], 1 }

</bundles_post_ra>
